<compile_context>
chip_gen: v6e
topology: v6e:2x2x1
jax: 0.10.0
libtpu: 0.0.40
codegen_flags: <defaults>
</compile_context>

<pallas_src>
import functools
import math

import jax
import jax.numpy as jnp
from jax.experimental import pallas as pl
from jax.experimental.pallas import tpu as pltpu


def _actor_kernel(x_ref, w1_ref, w2_ref, w3_ref, b_ref, ks_ref, out_ref):
    """One batch tile; compute is batch-on-lanes (transposed orientation).

    x_ref  : (tb, in_dim)        f32  natural-layout batch tile
    w*_ref : PyTorch layout [fan_out, fan_in], f32 (replicated across grid)
    b_ref  : (max(hid,out), 3)   f32  biases packed as columns (b1|b2|b3)
    ks_ref : (2,)                f32  SMEM: [k, shift] action rescale
    out_ref: (2*out_dim, tb)     f32  rows [0:out) = action^T, [out:2out) = logits^T
    """
    hid = w1_ref.shape[0]
    out_dim = out_ref.shape[0] // 2

    # In-kernel transpose (tb, in_dim) -> (in_dim, tb): XLU op, keeps the batch
    # tile on the lane axis for every matmul and store below.
    xT = x_ref[...].T

    b_all = b_ref[...]                       # (max_dim, 3) f32
    b1 = b_all[:hid, 0:1]                    # (hid, 1) column, broadcasts over lanes
    b2 = b_all[:hid, 1:2]
    b3 = b_all[:out_dim, 2:3]

    # Layer 1: (hid, in) @ (in, tb) -> (hid, tb); f32 MXU, f32 accumulation.
    h1 = jnp.dot(w1_ref[...], xT, preferred_element_type=jnp.float32)
    h1 = jnp.maximum(h1 + b1, 0.0)           # f32 on VPU

    # Layer 2
    h2 = jnp.dot(w2_ref[...], h1, preferred_element_type=jnp.float32)
    h2 = jnp.maximum(h2 + b2, 0.0)

    # Layer 3 (logits)
    logi = jnp.dot(w3_ref[...], h2, preferred_element_type=jnp.float32) + b3

    # Action head: k * tanh(logits) + shift (tanh on EUP, f32; k/shift from SMEM).
    k = ks_ref[0]
    shift = ks_ref[1]
    act = k * jnp.tanh(logi) + shift

    # Two direct lane-dense stores; out_dim=8 rows == one f32 sublane tile each.
    out_ref[:out_dim, :] = act.astype(out_ref.dtype)
    out_ref[out_dim:, :] = logi.astype(out_ref.dtype)


def _pick_batch_tile(B, requested=None):
    if requested is not None:
        return int(requested)
    # Latency-bound regime: one grid step (block == full batch) avoids per-step
    # overhead on single-TC v5e/v6e and avoids duplicating weight DMAs across
    # v7x cores when per-tile work is only a few us.
    if B <= 4096:
        return B
    # Very large batches: big lane-dense tiles (multiple of 128); >=2 steps lets
    # v7x's megacore split the "parallel" batch axis with meaningful per-tile work.
    return 4096


def _vmem_limit_bytes(in_dim, hid, out_dim, max_dim, tb):
    f32 = 4
    x_tile = tb * in_dim * f32
    out_tile = 2 * out_dim * tb * f32
    weights = (hid * in_dim + hid * hid + out_dim * hid) * f32
    biases = max_dim * 3 * f32
    acts = (in_dim + 2 * hid) * tb * f32          # x^T + h1 + h2 live values
    # x/out tiles double-buffered across grid steps; weights/biases replicated.
    need = 2 * (x_tile + out_tile) + weights + biases + acts
    want = max(4 * need, 16 << 20)                # 4x headroom for (8,128) padding
    try:
        cap = int(pltpu.get_tpu_info().vmem_capacity_bytes)
    except Exception:
        cap = 64 << 20                            # conservative (v7x-sized) fallback
    # Never request the full physical VMEM: leave room for compiler scratch.
    return int(min(want, int(cap * 3 // 4)))


def pack_actor_params(params):
    """One-time parameter packing — call ONCE (at init / after each update),
    NOT per forward.  Packs the three biases into a single (max_dim, 3) block
    so the kernel gets one bias DMA stream; weights are kept f32 in PyTorch
    [fan_out, fan_in] layout."""
    hid = params["w1"].shape[0]
    out_dim = params["w3"].shape[0]
    max_dim = max(hid, out_dim)
    b_packed = jnp.zeros((max_dim, 3), jnp.float32)
    b_packed = b_packed.at[:hid, 0].set(params["b1"].astype(jnp.float32))
    b_packed = b_packed.at[:hid, 1].set(params["b2"].astype(jnp.float32))
    b_packed = b_packed.at[:out_dim, 2].set(params["b3"].astype(jnp.float32))
    return {
        "w1": params["w1"].astype(jnp.float32),
        "w2": params["w2"].astype(jnp.float32),
        "w3": params["w3"].astype(jnp.float32),
        "b_packed": b_packed,
    }


def mlp_actor_forward(x, packed, action_bound, *, batch_tile=None):
    """MLPNetworkActor forward as a single Pallas kernel.

    x:       [B, in_dim] float32 (natural layout; no wrapper-side transpose/cast)
    packed:  output of pack_actor_params()
    returns: (action [B, out], logits [B, out]) in float32
    """
    B, in_dim = x.shape
    hid = packed["w1"].shape[0]
    out_dim = packed["w3"].shape[0]
    max_dim = packed["b_packed"].shape[0]

    a_min, a_max = action_bound
    k_shift = jnp.stack([
        jnp.asarray((a_max - a_min) * 0.5, jnp.float32),
        jnp.asarray((a_max + a_min) * 0.5, jnp.float32),
    ])                                            # (2,) f32 -> SMEM, no recompile

    tb = _pick_batch_tile(B, batch_tile)
    grid = (pl.cdiv(B, tb),)

    rep = lambda i: (0, 0)
    # TODO(synk): if hidden_dim grows toward the VMEM ceiling, mark the weight
    # BlockSpecs single-buffered (pipeline_mode=pl.Buffered(1), constant index
    # map) and add a K-tiled reduction grid axis instead of full replication.
    in_specs = [
        pl.BlockSpec((tb, in_dim), lambda i: (i, 0)),   # x (tiled over batch)
        pl.BlockSpec((hid, in_dim), rep),               # W1 (replicated)
        pl.BlockSpec((hid, hid), rep),                  # W2
        pl.BlockSpec((out_dim, hid), rep),              # W3
        pl.BlockSpec((max_dim, 3), rep),                # packed biases
        pl.BlockSpec(memory_space=pltpu.MemorySpace.SMEM),  # [k, shift] scalars
    ]
    out_specs = pl.BlockSpec((2 * out_dim, tb), lambda i: (0, i))

    flops = 2 * B * (in_dim * hid + hid * hid + hid * out_dim)
    bytes_accessed = (x.size + packed["w1"].size + packed["w2"].size
                      + packed["w3"].size + packed["b_packed"].size
                      + 2 * out_dim * B) * 4
    cost = pl.CostEstimate(flops=flops, transcendentals=B * out_dim,
                           bytes_accessed=bytes_accessed)

    out = pl.pallas_call(
        _actor_kernel,
        out_shape=jax.ShapeDtypeStruct((2 * out_dim, B), jnp.float32),
        grid_spec=pltpu.PrefetchScalarGridSpec(
            num_scalar_prefetch=0,
            grid=grid,
            in_specs=in_specs,
            out_specs=out_specs,
        ),
        compiler_params=pltpu.CompilerParams(
            dimension_semantics=("parallel",),
            vmem_limit_bytes=_vmem_limit_bytes(in_dim, hid, out_dim, max_dim, tb)),
        cost_estimate=cost,
    )(x.astype(jnp.float32), packed["w1"], packed["w2"], packed["w3"],
      packed["b_packed"], k_shift)

    # One transpose, then contiguous last-dim slices (fuse under jit).
    outT = out.T                                  # (B, 2*out_dim)
    action = outT[:, :out_dim]
    logits = outT[:, out_dim:]
    return action, logits


def init_params(key, in_dim, hidden_dim, out_dim):
    """Xavier-uniform with relu gain, biases 0.01 (matches MLPNetworkActor.init).
    Weights are stored in PyTorch nn.Linear layout [fan_out, fan_in]."""
    gain = math.sqrt(2.0)  # nn.init.calculate_gain('relu')

    def xavier(key, fan_out, fan_in):
        bound = gain * math.sqrt(6.0 / (fan_in + fan_out))
        return jax.random.uniform(key, (fan_out, fan_in), jnp.float32,
                                  minval=-bound, maxval=bound)

    k1, k2, k3 = jax.random.split(key, 3)
    return {
        "w1": xavier(k1, hidden_dim, in_dim),
        "b1": jnp.full((hidden_dim,), 0.01, jnp.float32),
        "w2": xavier(k2, hidden_dim, hidden_dim),
        "b2": jnp.full((hidden_dim,), 0.01, jnp.float32),
        "w3": xavier(k3, out_dim, hidden_dim),
        "b3": jnp.full((out_dim,), 0.01, jnp.float32),
    }


def _reference(x, params, action_bound):
    """Pure-JAX f32 reference of MLPNetworkActor.forward."""
    hp = jax.lax.Precision.HIGHEST
    h1 = jnp.maximum(jnp.dot(x, params["w1"].T, precision=hp) + params["b1"], 0.0)
    h2 = jnp.maximum(jnp.dot(h1, params["w2"].T, precision=hp) + params["b2"], 0.0)
    logi = jnp.dot(h2, params["w3"].T, precision=hp) + params["b3"]
    a_min, a_max = action_bound
    k = (a_max - a_min) / 2.0
    shift = (a_max + a_min) / 2.0
    return k * jnp.tanh(logi) + shift, logi


if __name__ == "__main__":
    key = jax.random.PRNGKey(0)
    kx, kp = jax.random.split(key)

    # Small MADDPG-style shapes: obs dim 16, hidden 64, action dim 8, batch 128
    # (one lane-dense batch tile, single grid step).
    B, in_dim, hidden_dim, out_dim = 128, 16, 64, 8
    action_bound = (-2.0, 2.0)

    x = jax.random.normal(kx, (B, in_dim), jnp.float32)
    params = init_params(kp, in_dim, hidden_dim, out_dim)
    packed = pack_actor_params(params)      # one-time packing, outside the hot path

    fwd = jax.jit(functools.partial(mlp_actor_forward, action_bound=action_bound))
    action, logits = fwd(x, packed)
    action = jax.block_until_ready(action)
    logits = jax.block_until_ready(logits)

    ref_action, ref_logits = _reference(x, params, action_bound)
    assert action.shape == (B, out_dim) and logits.shape == (B, out_dim)
    assert jnp.allclose(logits, ref_logits, atol=2e-3, rtol=2e-3), \
        float(jnp.max(jnp.abs(logits - ref_logits)))
    assert jnp.allclose(action, ref_action, atol=2e-3, rtol=2e-3), \
        float(jnp.max(jnp.abs(action - ref_action)))

    print("KERNEL_OK")
</pallas_src>

<mosaic_0001>
module attributes {stable_mosaic.version = 11 : i64} {
  func.func @_actor_kernel(%arg0: i32, %arg1: memref<128x16xf32, #tpu.memory_space<vmem>>, %arg2: memref<64x16xf32, #tpu.memory_space<vmem>>, %arg3: memref<64x64xf32, #tpu.memory_space<vmem>>, %arg4: memref<8x64xf32, #tpu.memory_space<vmem>>, %arg5: memref<64x3xf32, #tpu.memory_space<vmem>>, %arg6: memref<2xf32, #tpu.memory_space<smem>>, %arg7: memref<16x128xf32, #tpu.memory_space<vmem>>) attributes {dimension_semantics = [#tpu.dimension_semantics<parallel>], iteration_bounds = array<i64: 1>, scalar_prefetch = 0 : i64, scratch_operands = 0 : i64, tpu.core_type = #tpu.core_type<tc>, window_params = [{transform_indices = @transform_0, window_bounds = array<i64: 128, 16>}, {pipeline_mode = #tpu.pipeline_mode<synchronous>, transform_indices = @transform_1, window_bounds = array<i64: 64, 16>}, {pipeline_mode = #tpu.pipeline_mode<synchronous>, transform_indices = @transform_2, window_bounds = array<i64: 64, 64>}, {pipeline_mode = #tpu.pipeline_mode<synchronous>, transform_indices = @transform_3, window_bounds = array<i64: 8, 64>}, {pipeline_mode = #tpu.pipeline_mode<synchronous>, transform_indices = @transform_4, window_bounds = array<i64: 64, 3>}, {transform_indices = @transform_5, window_bounds = array<i64: 2>}, {transform_indices = @transform_6, window_bounds = array<i64: 16, 128>}]} {
    %c0 = arith.constant 0 : index
    %c0_0 = arith.constant 0 : index
    %0 = vector.load %arg1[%c0, %c0_0] : memref<128x16xf32, #tpu.memory_space<vmem>>, vector<128x16xf32>
    %1 = tpu.transpose %0, [1, 0] : vector<128x16xf32> -> vector<16x128xf32>
    %c0_1 = arith.constant 0 : index
    %c0_2 = arith.constant 0 : index
    %2 = vector.load %arg5[%c0_1, %c0_2] : memref<64x3xf32, #tpu.memory_space<vmem>>, vector<64x3xf32>
    %3 = vector.extract_strided_slice %2 {offsets = [0, 0], sizes = [64, 1], strides = [1, 1]} : vector<64x3xf32> to vector<64x1xf32>
    %4 = vector.extract_strided_slice %2 {offsets = [0, 1], sizes = [64, 1], strides = [1, 1]} : vector<64x3xf32> to vector<64x1xf32>
    %5 = vector.extract_strided_slice %2 {offsets = [0, 2], sizes = [8, 1], strides = [1, 1]} : vector<64x3xf32> to vector<8x1xf32>
    %c0_3 = arith.constant 0 : index
    %c0_4 = arith.constant 0 : index
    %6 = vector.load %arg2[%c0_3, %c0_4] : memref<64x16xf32, #tpu.memory_space<vmem>>, vector<64x16xf32>
    %cst = arith.constant dense<0.000000e+00> : vector<64x128xf32>
    %7 = tpu.matmul %6, %1, %cst {dimension_numbers = #tpu.dot_dimension_numbers<[1], [0], [0], [1], [0, 0, 1, 1], [], []>} : vector<64x16xf32>, vector<16x128xf32>, vector<64x128xf32> -> vector<64x128xf32>
    %8 = vector.broadcast %3 : vector<64x1xf32> to vector<64x128xf32>
    %9 = arith.addf %7, %8 : vector<64x128xf32>
    %cst_5 = arith.constant 0.000000e+00 : f32
    %10 = vector.broadcast %cst_5 : f32 to vector<64x128xf32>
    %11 = arith.maximumf %9, %10 : vector<64x128xf32>
    %c0_6 = arith.constant 0 : index
    %c0_7 = arith.constant 0 : index
    %12 = vector.load %arg3[%c0_6, %c0_7] : memref<64x64xf32, #tpu.memory_space<vmem>>, vector<64x64xf32>
    %cst_8 = arith.constant dense<0.000000e+00> : vector<64x128xf32>
    %13 = tpu.matmul %12, %11, %cst_8 {dimension_numbers = #tpu.dot_dimension_numbers<[1], [0], [0], [1], [0, 0, 1, 1], [], []>} : vector<64x64xf32>, vector<64x128xf32>, vector<64x128xf32> -> vector<64x128xf32>
    %14 = vector.broadcast %4 : vector<64x1xf32> to vector<64x128xf32>
    %15 = arith.addf %13, %14 : vector<64x128xf32>
    %cst_9 = arith.constant 0.000000e+00 : f32
    %16 = vector.broadcast %cst_9 : f32 to vector<64x128xf32>
    %17 = arith.maximumf %15, %16 : vector<64x128xf32>
    %c0_10 = arith.constant 0 : index
    %c0_11 = arith.constant 0 : index
    %18 = vector.load %arg4[%c0_10, %c0_11] : memref<8x64xf32, #tpu.memory_space<vmem>>, vector<8x64xf32>
    %cst_12 = arith.constant dense<0.000000e+00> : vector<8x128xf32>
    %19 = tpu.matmul %18, %17, %cst_12 {dimension_numbers = #tpu.dot_dimension_numbers<[1], [0], [0], [1], [0, 0, 1, 1], [], []>} : vector<8x64xf32>, vector<64x128xf32>, vector<8x128xf32> -> vector<8x128xf32>
    %20 = vector.broadcast %5 : vector<8x1xf32> to vector<8x128xf32>
    %21 = arith.addf %19, %20 : vector<8x128xf32>
    %c0_13 = arith.constant 0 : index
    %22 = memref.load %arg6[%c0_13] : memref<2xf32, #tpu.memory_space<smem>>
    %c1 = arith.constant 1 : index
    %23 = memref.load %arg6[%c1] : memref<2xf32, #tpu.memory_space<smem>>
    %24 = math.tanh %21 : vector<8x128xf32>
    %25 = vector.broadcast %22 : f32 to vector<8x128xf32>
    %26 = arith.mulf %25, %24 : vector<8x128xf32>
    %27 = vector.broadcast %23 : f32 to vector<8x128xf32>
    %28 = arith.addf %26, %27 : vector<8x128xf32>
    %c0_14 = arith.constant 0 : index
    %c0_15 = arith.constant 0 : index
    %29 = vector.load %arg7[%c0_14, %c0_15] : memref<16x128xf32, #tpu.memory_space<vmem>>, vector<8x128xf32>
    tpu.vector_store %arg7[%c0_14, %c0_15], %28 {strides = array<i32>} : memref<16x128xf32, #tpu.memory_space<vmem>>, vector<8x128xf32>,
    %c8 = arith.constant 8 : index
    %c0_16 = arith.constant 0 : index
    %30 = vector.load %arg7[%c8, %c0_16] : memref<16x128xf32, #tpu.memory_space<vmem>>, vector<8x128xf32>
    tpu.vector_store %arg7[%c8, %c0_16], %21 {strides = array<i32>} : memref<16x128xf32, #tpu.memory_space<vmem>>, vector<8x128xf32>,
    return
  }
  func.func @transform_0(%arg0: i32) -> (i32, i32) {
    %c0_i32 = arith.constant 0 : i32
    %c0_i32_0 = arith.constant 0 : i32
    return %arg0, %c0_i32 : i32, i32
  }
  func.func @transform_1(%arg0: i32) -> (i32, i32) {
    %c0_i32 = arith.constant 0 : i32
    %c0_i32_0 = arith.constant 0 : i32
    %c0_i32_1 = arith.constant 0 : i32
    return %c0_i32, %c0_i32_0 : i32, i32
  }
  func.func @transform_2(%arg0: i32) -> (i32, i32) {
    %c0_i32 = arith.constant 0 : i32
    %c0_i32_0 = arith.constant 0 : i32
    %c0_i32_1 = arith.constant 0 : i32
    return %c0_i32, %c0_i32_0 : i32, i32
  }
  func.func @transform_3(%arg0: i32) -> (i32, i32) {
    %c0_i32 = arith.constant 0 : i32
    %c0_i32_0 = arith.constant 0 : i32
    %c0_i32_1 = arith.constant 0 : i32
    return %c0_i32, %c0_i32_0 : i32, i32
  }
  func.func @transform_4(%arg0: i32) -> (i32, i32) {
    %c0_i32 = arith.constant 0 : i32
    %c0_i32_0 = arith.constant 0 : i32
    %c0_i32_1 = arith.constant 0 : i32
    return %c0_i32, %c0_i32_0 : i32, i32
  }
  func.func @transform_5(%arg0: i32) -> i32 {
    %c0_i32 = arith.constant 0 : i32
    %c0_i32_0 = arith.constant 0 : i32
    return %c0_i32 : i32
  }
  func.func @transform_6(%arg0: i32) -> (i32, i32) {
    %c0_i32 = arith.constant 0 : i32
    %c0_i32_0 = arith.constant 0 : i32
    return %c0_i32, %arg0 : i32, i32
  }
}

</mosaic_0001>

<bundles_post_ra>
// kernel: mlp_actor_forward.1
= control target key start
LH: loop header
LB: loop body
LE: loop exit
PB: predicated region body
PF: predicated region fallthrough
CT: control target
= control target key end

     0   :  { %11 = vsyncpa [#allocation3], 0  ;;  %s1017_s0 = inlined_call_operand.vmem [shape: f32[128,16], index: 0, kind: input, shape index: {}]   ;;  %s1018_s1 = inlined_call_operand.vmem [shape: f32[64,16], index: 1, kind: input, shape index: {}]   ;;  %s1019_s2 = inlined_call_operand.vmem [shape: f32[64,64], index: 2, kind: input, shape index: {}]   ;;  %s1020_s3 = inlined_call_operand.vmem [shape: f32[8,64], index: 3, kind: input, shape index: {}]   ;;  %s1021_s4 = inlined_call_operand.vmem [shape: f32[64,3], index: 4, kind: input, shape index: {}]   ;;  %s1022_s5 = inlined_call_operand.vmem [shape: f32[2], index: 5, kind: input, shape index: {}]   ;;  %s1023_s6 = inlined_call_operand.vmem [shape: f32[16,128], index: 6, kind: output, shape index: {}]  }
   0x1   :  { %s28_s23 = sshll.u32 %s1022_s5, 4  ;;  %s29_s23 = int_to_ptr.vmem [resolvable:$true] %s28_s23 }
   0x2   :  { %s752_s24 = scalar_lea.vmem %s29_s23, 16  ;;  %p757_p1 = scmp.lt.s32.totalorder %s29_s23, %s29_s23 }
   0x3   :  { %p753_p0 = scmp.ne.s32.totalorder %s29_s23, %s752_s24  ;;  %p758_p2 = scmp.lt.s32.totalorder %s752_s24, %s752_s24 }
   0x5   :  { %p759_p3 = por %p758_p2, %p757_p1 }
   0x7   :  { %p760_p4 = pnand %p759_p3, %p753_p0 }
   0x9   :  { %763 = shalt.err (!%p760_p4)
}
   0xa   :  { %s766_s25 = smov [#allocation2]  }
   0xb   :  { %31 = dma.vmem_to_smem %s29_s23, 16, %s766_s25, [#allocation3]  }
   0xc   :  { %764 = dma.done.wait [#allocation3], 16  }
   0xd   :  { %765 = vsyncadd [#allocation3], 4294967280 }
   0xe   :  { %35 = sfence }
   0xf   :  { %v51_v0 = vld [vmem:[%s1017_s0 + $0x78] sm:$0xff]  ;;  %vm108_vm0 = vcmask 130048   ;;  %v50_v1 = vld [vmem:[%s1017_s0 + $0x70] sm:$0xff]  ;;  %v767_v2 = vmov 0   ;;  %v49_v3 = vld [vmem:[%s1017_s0 + $0x68] sm:$0xff]  ;;  %vm334_vm1 = vcmask 523264  }
  0x10   :  { %647 = vmatprep.subr.msk.mxu0 %vm108_vm0, %v51_v0  ;;  %744 = vset.pattern.permute.xlu0 %v767_v2  ;;  %v60_v4 = vld [vmem:[%s1018_s1] sm:$0xff]  ;;  %v834_v6 = vld [vmem:[%s1021_s4 + $0x38] sm:$0xff]  ;;  %v839_v7 = vld [vmem:[%s1021_s4 + $0x28] sm:$0xff]  ;;  %v768_v34 = vmov 1   ;;  %vm770_vm2 = vmmov 0   ;;  %s597_s29 = sld [smem:[#allocation2 + $0x1]] }
  0x11   :  { %648 = vmatpush3.xpose.msk.msra.mxu0 %vm108_vm0, %v51_v0  ;;  %745 = vset.pattern.permute.xlu1 %v767_v2  ;;  %v48_v5 = vld [vmem:[%s1017_s0 + $0x60] sm:$0xff]  ;;  %v847_v8 = vld [vmem:[%s1021_s4 + $0x30] sm:$0xff]  ;;  %v47_v10 = vld [vmem:[%s1017_s0 + $0x58] sm:$0xff] }
  0x12   :  { %649 = vmatprep.subr.msk.mxu0 %vm108_vm0, %v50_v1  ;;  %679 = vmatprep.mubr.msk.f32.mxu0 %vm108_vm0, %v60_v4  ;;  %v852_v9 = vld [vmem:[%s1021_s4 + $0x20] sm:$0xff]  ;;  %v864_v11 = vld [vmem:[%s1021_s4 + $0x18] sm:$0xff]  ;;  %v869_v12 = vld [vmem:[%s1021_s4 + $0x10] sm:$0xff] }
  0x13   :  { %105 = vperm.xlu0 %744, %v834_v6   ;;  %95 = vperm.xlu1 %745, %v839_v7   ;;  %v46_v13 = vld [vmem:[%s1017_s0 + $0x50] sm:$0xff]  ;;  %v53_v14 = vld [vmem:[%s1021_s4 + $0x8] sm:$0xff]  ;;  %v884_v15 = vld [vmem:[%s1021_s4] sm:$0xff] }
  0x14   :  { %v45_v16 = vld [vmem:[%s1017_s0 + $0x48] sm:$0xff]  ;;  %v44_v17 = vld [vmem:[%s1017_s0 + $0x40] sm:$0xff]  ;;  %v43_v18 = vld [vmem:[%s1017_s0 + $0x38] sm:$0xff] }
  0x15   :  { %650 = vmatpush3.xpose.msk.msra.mxu0 %vm108_vm0, %v50_v1  ;;  %v42_v19 = vld [vmem:[%s1017_s0 + $0x30] sm:$0xff]  ;;  %v41_v20 = vld [vmem:[%s1017_s0 + $0x28] sm:$0xff]  ;;  %v40_v21 = vld [vmem:[%s1017_s0 + $0x20] sm:$0xff] }
  0x16   :  { %651 = vmatprep.subr.msk.mxu0 %vm108_vm0, %v49_v3  ;;  %v39_v22 = vld [vmem:[%s1017_s0 + $0x18] sm:$0xff]  ;;  %v38_v23 = vld [vmem:[%s1017_s0 + $0x10] sm:$0xff]  ;;  %v37_v24 = vld [vmem:[%s1017_s0 + $0x8] sm:$0xff] }
  0x17   :  { %100 = vperm.xlu0 %744, %v847_v8   ;;  %90 = vperm.xlu1 %745, %v852_v9   ;;  %v36_v25 = vld [vmem:[%s1017_s0] sm:$0xff]  ;;  %v61_v26 = vld [vmem:[%s1018_s1 + $0x8] sm:$0xff]  ;;  %v62_v27 = vld [vmem:[%s1018_s1 + $0x10] sm:$0xff]  ;;  %s550_s0 = sld [smem:[#allocation2]] }
  0x18   :  { %v63_v28 = vld [vmem:[%s1018_s1 + $0x18] sm:$0xff]  ;;  %v64_v29 = vld [vmem:[%s1018_s1 + $0x20] sm:$0xff]  ;;  %v65_v30 = vld [vmem:[%s1018_s1 + $0x28] sm:$0xff] }
  0x19   :  { %652 = vmatpush3.xpose.msk.msra.mxu0 %vm108_vm0, %v49_v3  ;;  %v66_v31 = vld [vmem:[%s1018_s1 + $0x30] sm:$0xff]  ;;  %v67_v32 = vld [vmem:[%s1018_s1 + $0x38] sm:$0xff]  ;;  %v294_v33 = vld [vmem:[%s1019_s2] sm:$0xff] }
  0x1a   :  { %653 = vmatprep.subr.msk.mxu0 %vm108_vm0, %v48_v5  ;;  %707 = vmatprep.mubr.msk.f32.mxu1 %vm334_vm1, %v294_v33  ;;  %v295_v3 = vld [vmem:[%s1019_s2 + $0x8] sm:$0xff]  ;;  %v296_v4 = vld [vmem:[%s1019_s2 + $0x10] sm:$0xff] }
  0x1b   :  { %85 = vperm.xlu0 %744, %v864_v11   ;;  %80 = vperm.xlu1 %745, %v869_v12  }
  0x1d   :  { %654 = vmatpush3.xpose.msk.msra.mxu0 %vm108_vm0, %v48_v5  ;;  %v297_v5 = vld [vmem:[%s1019_s2 + $0x18] sm:$0xff] }
  0x1e   :  { %655 = vmatprep.subr.msk.mxu0 %vm108_vm0, %v47_v10 }
  0x1f   :  { %75 = vperm.xlu0 %744, %v53_v14   ;;  %70 = vperm.xlu1 %745, %v884_v15  }
  0x21   :  { %656 = vmatpush3.xpose.msk.msra.mxu0 %vm108_vm0, %v47_v10  ;;  %v769_v10 = vmov 0.0  }
  0x22   :  { %657 = vmatprep.subr.msk.mxu0 %vm108_vm0, %v46_v13 }
  0x23   :  { %747 = vset.pattern.permute.xlu1 %v768_v34  ;;  %746 = vset.pattern.permute.xlu0 %v768_v34 }
  0x24   :  { %327 = vperm.xlu1 %747, %v847_v8   ;;  %331 = vperm.xlu0 %746, %v834_v6   ;;  %v298_v6 = vld [vmem:[%s1019_s2 + $0x20] sm:$0xff]  ;;  %v300_v8 = vld [vmem:[%s1019_s2 + $0x30] sm:$0xff] }
  0x25   :  { %658 = vmatpush3.xpose.msk.msra.mxu0 %vm108_vm0, %v46_v13 }
  0x26   :  { %659 = vmatprep.subr.msk.mxu0 %vm108_vm0, %v45_v16 }
  0x28   :  { %323 = vperm.xlu1 %747, %v839_v7   ;;  %319 = vperm.xlu0 %746, %v852_v9   ;;  %v299_v7 = vld [vmem:[%s1019_s2 + $0x28] sm:$0xff]  ;;  %v301_v9 = vld [vmem:[%s1019_s2 + $0x38] sm:$0xff] }
  0x29   :  { %660 = vmatpush3.xpose.msk.msra.mxu0 %vm108_vm0, %v45_v16 }
  0x2a   :  { %661 = vmatprep.subr.msk.mxu0 %vm108_vm0, %v44_v17 }
  0x2c   :  { %315 = vperm.xlu1 %747, %v864_v11   ;;  %311 = vperm.xlu0 %746, %v869_v12   ;;  %v771_v11 = vmov 2  }
  0x2d   :  { %662 = vmatpush3.xpose.msk.msra.mxu0 %vm108_vm0, %v44_v17 }
  0x2e   :  { %663 = vmatprep.subr.msk.mxu0 %vm108_vm0, %v43_v18 }
  0x30   :  { %307 = vperm.xlu1 %747, %v53_v14   ;;  %303 = vperm.xlu0 %746, %v884_v15  }
  0x31   :  { %664 = vmatpush3.xpose.msk.msra.mxu0 %vm108_vm0, %v43_v18 }
  0x32   :  { %665 = vmatprep.subr.msk.mxu0 %vm108_vm0, %v42_v19 }
  0x34   :  { %748 = vset.pattern.permute.xlu1 %v771_v11  ;;  %749 = vset.pattern.permute.xlu0 %v771_v11 }
  0x35   :  { %666 = vmatpush3.xpose.msk.msra.mxu0 %vm108_vm0, %v42_v19  ;;  %474 = vperm.xlu1 %748, %v884_v15  }
  0x36   :  { %667 = vmatprep.subr.msk.mxu0 %vm108_vm0, %v41_v20 }
  0x39   :  { %668 = vmatpush3.xpose.msk.msra.mxu0 %vm108_vm0, %v41_v20 }
  0x3a   :  { %669 = vmatprep.subr.msk.mxu0 %vm108_vm0, %v40_v21 }
  0x3d   :  { %670 = vmatpush3.xpose.msk.msra.mxu0 %vm108_vm0, %v40_v21 }
  0x3e   :  { %671 = vmatprep.subr.msk.mxu0 %vm108_vm0, %v39_v22 }
  0x41   :  { %672 = vmatpush3.xpose.msk.msra.mxu0 %vm108_vm0, %v39_v22 }
  0x42   :  { %673 = vmatprep.subr.msk.mxu0 %vm108_vm0, %v38_v23 }
  0x45   :  { %674 = vmatpush3.xpose.msk.msra.mxu0 %vm108_vm0, %v38_v23 }
  0x46   :  { %675 = vmatprep.subr.msk.mxu0 %vm108_vm0, %v37_v24 }
  0x49   :  { %676 = vmatpush3.xpose.msk.msra.mxu0 %vm108_vm0, %v37_v24 }
  0x4a   :  { %677 = vmatprep.subr.msk.mxu0 %vm108_vm0, %v36_v25 }
  0x4d   :  { %678 = vmatpush3.xpose.msk.msra.mxu0 %vm108_vm0, %v36_v25 }
  0x50   :  { %680 = vmatmul.mubr.msk.f32.vlgmr.msra.gmra.mxu0 %vm108_vm0, %v61_v26 }
  0x51   :  { %682 = vmatprep.mubr.msk.f32.mxu0 %vm108_vm0, %v62_v27 }
  0x54   :  { %683 = vmatmul.mubr.msk.f32.gmra.mxu0 %vm108_vm0, %v63_v28 }
  0x55   :  { %685 = vmatprep.mubr.msk.f32.mxu0 %vm108_vm0, %v64_v29 }
  0x58   :  { %686 = vmatmul.mubr.msk.f32.gmra.mxu0 %vm108_vm0, %v65_v30 }
  0x59   :  { %688 = vmatprep.mubr.msk.f32.mxu0 %vm108_vm0, %v66_v31 }
  0x5c   :  { %689 = vmatmul.mubr.msk.f32.gmra.mxu0 %vm108_vm0, %v67_v32 }
  0x8e   :  { %v106_v36 = vpop.permute.xlu0 %105  ;;  %v96_v38 = vpop.permute.xlu1 %95 }
  0x92   :  { %v101_v41 = vpop.permute.xlu0 %100  ;;  %v91_v43 = vpop.permute.xlu1 %90 }
  0x96   :  { %v86_v47 = vpop.permute.xlu0 %85  ;;  %v81_v52 = vpop.permute.xlu1 %80 }
  0x9a   :  { %v76_v57 = vpop.permute.xlu0 %75  ;;  %v71_v60 = vpop.permute.xlu1 %70 }
  0x9f   :  { %v328_v13 = vpop.permute.xlu1 %327  ;;  %v332_v16 = vpop.permute.xlu0 %331 }
  0xa3   :  { %v324_v19 = vpop.permute.xlu1 %323  ;;  %v320_v21 = vpop.permute.xlu0 %319 }
  0xa7   :  { %v316_v25 = vpop.permute.xlu1 %315  ;;  %v312_v30 = vpop.permute.xlu0 %311 }
  0xab   :  { %v308_v34 = vpop.permute.xlu1 %307 }
 0x110   :  { %v681_v35 = vpop.f32.mrf.mxu0 }
 0x111   :  { %v253_v61 = vadd.f32 %v681_v35, %v76_v57 }
 0x112   :  { %v247_v37 = vpop.f32.mrf.mxu0 }
 0x113   :  { %v248_v63 = vadd.f32 %v247_v37, %v71_v60  ;;  %v287_v1 = vmax.f32 %v253_v61, 0.0  ;;  %v304_v37 = vpop.permute.xlu0 %303 }
 0x114   :  { %v684_v39 = vpop.f32.mrf.mxu0 }
 0x115   :  { %v263_v55 = vadd.f32 %v684_v39, %v86_v47  ;;  %v286_v2 = vmax.f32 %v248_v63, 0.0 }
 0x116   :  { %v257_v40 = vpop.f32.mrf.mxu0 }
 0x117   :  { %v258_v58 = vadd.f32 %v257_v40, %v81_v52  ;;  %v289_v62 = vmax.f32 %v263_v55, 0.0 }
 0x118   :  { %v687_v42 = vpop.f32.mrf.mxu0 }
 0x119   :  { %v273_v49 = vadd.f32 %v687_v42, %v96_v38  ;;  %v288_v0 = vmax.f32 %v258_v58, 0.0 }
 0x11a   :  { %v267_v44 = vpop.f32.mrf.mxu0 }
 0x11b   :  { %v268_v53 = vadd.f32 %v267_v44, %v91_v43  ;;  %v291_v56 = vmax.f32 %v273_v49, 0.0  ;;  %v472_v44 = vld [vmem:[%s1020_s3] sm:$0xff]  ;;  %v553_v49 = vstv %s550_s0 }
 0x11c   :  { %v690_v45 = vpop.f32.mrf.mxu0 }
 0x11d   :  { %v283_v46 = vadd.f32 %v690_v45, %v106_v36  ;;  %v290_v59 = vmax.f32 %v268_v53, 0.0  ;;  %v475_v45 = vpop.permute.xlu1 %474 }
 0x11e   :  { %v277_v48 = vpop.f32.mrf.mxu0 }
 0x11f   :  { %v293_v50 = vmax.f32 %v283_v46, 0.0  ;;  %v278_v51 = vadd.f32 %v277_v48, %v101_v41 }
 0x121   :  { %v292_v54 = vmax.f32 %v278_v51, 0.0  ;;  %691 = vmatprep.subr.mxu1 %v293_v50  ;;  %v555_v51 = vstv %s597_s29 }
 0x122   :  { %692 = vmatpush3.msra.mxu1 %v293_v50 }
 0x123   :  { %693 = vmatprep.subr.mxu1 %v292_v54 }
 0x124   :  { %694 = vmatpush3.msra.mxu1 %v292_v54 }
 0x125   :  { %695 = vmatprep.subr.mxu1 %v291_v56 }
 0x126   :  { %696 = vmatpush3.msra.mxu1 %v291_v56 }
 0x127   :  { %697 = vmatprep.subr.mxu1 %v290_v59 }
 0x128   :  { %698 = vmatpush3.msra.mxu1 %v290_v59 }
 0x129   :  { %699 = vmatprep.subr.mxu1 %v289_v62 }
 0x12a   :  { %700 = vmatpush3.msra.mxu1 %v289_v62 }
 0x12b   :  { %701 = vmatprep.subr.mxu1 %v288_v0 }
 0x12c   :  { %702 = vmatpush3.msra.mxu1 %v288_v0 }
 0x12d   :  { %703 = vmatprep.subr.mxu1 %v287_v1 }
 0x12e   :  { %704 = vmatpush3.msra.mxu1 %v287_v1 }
 0x12f   :  { %705 = vmatprep.subr.mxu1 %v286_v2 }
 0x130   :  { %706 = vmatpush3.msra.mxu1 %v286_v2 }
 0x131   :  { %708 = vmatmul.mubr.msk.f32.vlgmr.msra.gmra.mxu1 %vm334_vm1, %v295_v3  ;;  %719 = vmatprep.subr.mxu1 %v769_v10 }
 0x132   :  { %710 = vmatprep.mubr.msk.f32.mxu1 %vm334_vm1, %v296_v4 }
 0x135   :  { %711 = vmatmul.mubr.msk.f32.gmra.mxu1 %vm334_vm1, %v297_v5 }
 0x136   :  { %713 = vmatprep.mubr.msk.f32.mxu1 %vm334_vm1, %v298_v6 }
 0x139   :  { %714 = vmatmul.mubr.msk.f32.gmra.mxu1 %vm334_vm1, %v299_v7 }
 0x13a   :  { %716 = vmatprep.mubr.msk.f32.mxu1 %vm334_vm1, %v300_v8 }
 0x13d   :  { %717 = vmatmul.mubr.msk.f32.gmra.mxu1 %vm334_vm1, %v301_v9 }
 0x13e   :  { %735 = vmatprep.mubr.msk.f32.mxu1 %vm770_vm2, %v769_v10 }
 0x1f1   :  { %v709_v12 = vpop.f32.mrf.mxu1 }
 0x1f2   :  { %v431_v38 = vadd.f32 %v709_v12, %v308_v34 }
 0x1f3   :  { %v425_v14 = vpop.f32.mrf.mxu1 }
 0x1f4   :  { %v426_v40 = vadd.f32 %v425_v14, %v304_v37  ;;  %v465_v42 = vmax.f32 %v431_v38, 0.0 }
 0x1f5   :  { %v712_v17 = vpop.f32.mrf.mxu1 }
 0x1f6   :  { %v441_v32 = vadd.f32 %v712_v17, %v316_v25  ;;  %v464_v43 = vmax.f32 %v426_v40, 0.0 }
 0x1f7   :  { %v435_v18 = vpop.f32.mrf.mxu1 }
 0x1f8   :  { %v436_v35 = vadd.f32 %v435_v18, %v312_v30  ;;  %v467_v39 = vmax.f32 %v441_v32, 0.0 }
 0x1f9   :  { %v715_v20 = vpop.f32.mrf.mxu1 }
 0x1fa   :  { %v451_v27 = vadd.f32 %v715_v20, %v324_v19  ;;  %v466_v41 = vmax.f32 %v436_v35, 0.0 }
 0x1fb   :  { %v445_v22 = vpop.f32.mrf.mxu1 }
 0x1fc   :  { %v446_v31 = vadd.f32 %v445_v22, %v320_v21  ;;  %v469_v33 = vmax.f32 %v451_v27, 0.0 }
 0x1fd   :  { %v718_v23 = vpop.f32.mrf.mxu1 }
 0x1fe   :  { %v461_v24 = vadd.f32 %v718_v23, %v332_v16  ;;  %v468_v36 = vmax.f32 %v446_v31, 0.0 }
 0x1ff   :  { %v455_v26 = vpop.f32.mrf.mxu1 }
 0x200   :  { %v471_v28 = vmax.f32 %v461_v24, 0.0  ;;  %v456_v29 = vadd.f32 %v455_v26, %v328_v13 }
 0x202   :  { %v470_v15 = vmax.f32 %v456_v29, 0.0  ;;  %720 = vmatpush3.msra.mxu1 %v471_v28 }
 0x203   :  { %721 = vmatprep.subr.mxu1 %v769_v10 }
 0x204   :  { %722 = vmatpush3.msra.mxu1 %v470_v15 }
 0x205   :  { %723 = vmatprep.subr.mxu1 %v769_v10 }
 0x206   :  { %724 = vmatpush3.msra.mxu1 %v469_v33 }
 0x207   :  { %725 = vmatprep.subr.mxu1 %v769_v10 }
 0x208   :  { %726 = vmatpush3.msra.mxu1 %v468_v36 }
 0x209   :  { %727 = vmatprep.subr.mxu1 %v769_v10 }
 0x20a   :  { %728 = vmatpush3.msra.mxu1 %v467_v39 }
 0x20b   :  { %729 = vmatprep.subr.mxu1 %v769_v10 }
 0x20c   :  { %730 = vmatpush3.msra.mxu1 %v466_v41 }
 0x20d   :  { %731 = vmatprep.subr.mxu1 %v769_v10 }
 0x20e   :  { %732 = vmatpush3.msra.mxu1 %v465_v42 }
 0x20f   :  { %733 = vmatprep.subr.mxu1 %v769_v10 }
 0x210   :  { %734 = vmatpush3.msra.mxu1 %v464_v43 }
 0x211   :  { %736 = vmatmul.mubr.msk.f32.vlgmr.msra.gmra.mxu1 %vm334_vm1, %v472_v44 }
 0x2d1   :  { %v546_v46 = vpop.f32.mrf.mxu1 }
 0x2d2   :  { %v547_v47 = vadd.f32 %v546_v46, %v475_v45 }
 0x2d3   :  { %v737_v48 = vpop.f32.mrf.mxu1 }
 0x2d4   :  { %750 = vtanh.f32 %v547_v47  ;;  %558 = vst [vmem:[%s1023_s6 + $0x8] sm:$0xff] %v547_v47 }
 0x2e1   :  { %v751_v50 = vpop.eup %750 }
 0x2e2   :  { %v554_v52 = vmul.f32 %v751_v50, %v553_v49 }
 0x2e4   :  { %v556_v53 = vadd.f32 %v555_v51, %v554_v52 }
 0x2e6   :  { %557 = vst [vmem:[%s1023_s6] sm:$0xff] %v556_v53 }
 0x2e7   :  { %563 = vsyncpa [#allocation3], 1 }

</bundles_post_ra>
